<compile_context>
chip_gen: v6e
topology: v6e:2x2x1
jax: 0.10.0
libtpu: 0.0.40
codegen_flags: <defaults>
</compile_context>

<pallas_src>
import jax
import jax.numpy as jnp
from jax import lax
from jax.experimental import pallas as pl
from jax.experimental.pallas import tpu as pltpu


def _positions_kernel(params_ref, out_ref):
    """One batch element, one row-tile.

    params_ref: (B, 3) f32 in SMEM: [step', shift_y', shift_x'] per batch,
                with the output affine (x*2/image_size - 1) already folded in.
    out_ref:    (2, R, T) f32 VMEM block (batch dim squeezed);
                channel 0 = y positions, channel 1 = x positions.
    """
    b = pl.program_id(0)
    row_tile = out_ref.shape[1]
    ncols = out_ref.shape[2]
    r0 = pl.program_id(1) * row_tile

    step_p = params_ref[b, 0]
    shift_y = params_ref[b, 1]
    shift_x = params_ref[b, 2]

    rows = (lax.broadcasted_iota(jnp.int32, (row_tile, ncols), 0) + r0
            ).astype(jnp.float32)
    cols = lax.broadcasted_iota(jnp.int32, (row_tile, ncols), 1
                                ).astype(jnp.float32)

    # One FMA per element per channel; scalar operands splat from SMEM.
    out_ref[0] = rows * step_p + shift_y   # y channel (varies along rows)
    out_ref[1] = cols * step_p + shift_x   # x channel (varies along cols)


def _choose_row_tile(batch, target_size, *, budget_bytes=8 * 1024 * 1024):
    """Rows per (2, R, T) output block: multiple of 8 (or full T), VMEM-bounded."""
    T = target_size
    per_row_bytes = 2 * T * 4                     # both channels, one row, f32
    r = max(8, (budget_bytes // per_row_bytes) // 8 * 8)
    if r >= T:
        r = T                                      # whole image in one block
    # v7x megacore: ensure >= 2 independent grid steps for non-trivial outputs
    # when the batch axis alone doesn't provide them.
    if batch == 1 and r == T and per_row_bytes * T > (1 << 20):
        half = ((T + 1) // 2 + 7) // 8 * 8
        if 0 < half < T:
            r = half
    return r


def fast_positions_computer(tensor_tuple, *, noise_border_width, image_size):
    input_data, start_x, start_y, chunk_size = tensor_tuple
    batch_size = input_data.shape[0]
    target_size = input_data.shape[2]

    inner = target_size - 2 * noise_border_width
    if inner <= 0:
        raise ValueError(
            "target_size - 2*noise_border_width must be > 0 "
            f"(got target_size={target_size}, noise_border_width={noise_border_width})")

    cs = chunk_size.reshape(-1).astype(jnp.float32)
    sx = start_x.reshape(-1).astype(jnp.float32)
    sy = start_y.reshape(-1).astype(jnp.float32)

    # Tiny per-batch scalar math, done once on the host-side JAX graph.
    bw = (float(noise_border_width) / float(inner)) * cs          # border width
    step = (cs + 2.0 * bw) / float(target_size)
    offset = -bw + 0.5 + (step - 1.0) * 0.5

    # TODO(synk): unmap_tensor_function is not defined in the provided source;
    # assuming the standard [0,1] -> [-1,1] unmapping (x * 2 - 1), folded here.
    scale = 2.0 / float(image_size)
    step_p = step * scale
    shift_y_p = (offset + sy) * scale - 1.0
    shift_x_p = (offset + sx) * scale - 1.0
    params = jnp.stack([step_p, shift_y_p, shift_x_p], axis=1)    # (B, 3) f32

    row_tile = _choose_row_tile(batch_size, target_size)
    grid = (batch_size, pl.cdiv(target_size, row_tile))

    positions = pl.pallas_call(
        _positions_kernel,
        out_shape=jax.ShapeDtypeStruct(
            (batch_size, 2, target_size, target_size), jnp.float32),
        grid=grid,
        in_specs=[pl.BlockSpec(memory_space=pltpu.MemorySpace.SMEM)],
        out_specs=pl.BlockSpec((None, 2, row_tile, target_size),
                               lambda b, r: (b, 0, r, 0)),
        compiler_params=pltpu.CompilerParams(
            dimension_semantics=("parallel", "parallel"),
            vmem_limit_bytes=32 * 1024 * 1024),
    )(params)

    return (input_data, positions)


def _reference(tensor_tuple, noise_border_width, image_size):
    """Pure-JAX reference mirroring the PyTorch forward."""
    input_data, start_x, start_y, chunk_size = tensor_tuple
    B = input_data.shape[0]
    T = input_data.shape[2]
    inner = T - 2 * noise_border_width
    cs = chunk_size.reshape(-1).astype(jnp.float32)
    bw = noise_border_width * cs / inner                              # [B]
    step = (cs + 2 * bw) / T                                          # [B]
    base = (jnp.arange(T, dtype=jnp.float32) * step[:, None]
            - bw[:, None] + 0.5 + (step[:, None] - 1.0) / 2.0)        # [B,T]
    base = jnp.tile(base, (1, T)).reshape(B, 1, T, T)                 # varies along j
    x_pos = base + start_x.reshape(B, 1, 1, 1)
    y_pos = jnp.swapaxes(base, 2, 3) + start_y.reshape(B, 1, 1, 1)
    positions = jnp.concatenate((y_pos, x_pos), axis=1) / image_size
    return 2.0 * positions - 1.0


if __name__ == "__main__":
    key = jax.random.PRNGKey(0)
    k1, k2, k3, k4 = jax.random.split(key, 4)

    B, C, T = 2, 4, 16
    noise_border_width = 2
    image_size = 64

    input_data = jax.random.normal(k1, (B, C, T, T), dtype=jnp.float32)
    start_x = jax.random.uniform(k2, (B,), minval=0.0, maxval=32.0,
                                 dtype=jnp.float32)
    start_y = jax.random.uniform(k3, (B,), minval=0.0, maxval=32.0,
                                 dtype=jnp.float32)
    chunk_size = jax.random.uniform(k4, (B,), minval=8.0, maxval=24.0,
                                    dtype=jnp.float32)

    tensor_tuple = (input_data, start_x, start_y, chunk_size)

    out_input, out_positions = fast_positions_computer(
        tensor_tuple,
        noise_border_width=noise_border_width,
        image_size=image_size,
    )
    jax.block_until_ready(out_positions)

    ref_positions = _reference(tensor_tuple, noise_border_width, image_size)
    assert out_input.shape == input_data.shape
    assert out_positions.shape == (B, 2, T, T)
    assert jnp.allclose(out_positions, ref_positions, atol=1e-5, rtol=1e-5)
    assert jnp.array_equal(out_input, input_data)

    print("KERNEL_OK")
</pallas_src>

<mosaic_0001>
module attributes {stable_mosaic.version = 11 : i64} {
  func.func @_positions_kernel(%arg0: i32, %arg1: i32, %arg2: memref<2x3xf32, #tpu.memory_space<smem>>, %arg3: memref<1x2x16x16xf32, #tpu.memory_space<vmem>>) attributes {dimension_semantics = [#tpu.dimension_semantics<parallel>, #tpu.dimension_semantics<parallel>], iteration_bounds = array<i64: 2, 1>, scalar_prefetch = 0 : i64, scratch_operands = 0 : i64, tpu.core_type = #tpu.core_type<tc>, window_params = [{transform_indices = @transform_0, window_bounds = array<i64: 2, 3>}, {transform_indices = @transform_1, window_bounds = array<i64: 1, 2, 16, 16>}]} {
    %c16_i32 = arith.constant 16 : i32
    %0 = arith.muli %arg1, %c16_i32 : i32
    %1 = arith.index_cast %arg0 : i32 to index
    %c0 = arith.constant 0 : index
    %2 = memref.load %arg2[%1, %c0] : memref<2x3xf32, #tpu.memory_space<smem>>
    %3 = arith.index_cast %arg0 : i32 to index
    %c1 = arith.constant 1 : index
    %4 = memref.load %arg2[%3, %c1] : memref<2x3xf32, #tpu.memory_space<smem>>
    %5 = arith.index_cast %arg0 : i32 to index
    %c2 = arith.constant 2 : index
    %6 = memref.load %arg2[%5, %c2] : memref<2x3xf32, #tpu.memory_space<smem>>
    %7 = tpu.iota {dimensions = array<i32: 0>} : vector<16x16xi32>
    %8 = vector.broadcast %0 : i32 to vector<16x16xi32>
    %9 = arith.addi %7, %8 : vector<16x16xi32>
    %10 = arith.sitofp %9 : vector<16x16xi32> to vector<16x16xf32>
    %11 = tpu.iota {dimensions = array<i32: 1>} : vector<16x16xi32>
    %12 = arith.sitofp %11 : vector<16x16xi32> to vector<16x16xf32>
    %13 = vector.broadcast %2 : f32 to vector<16x16xf32>
    %14 = arith.mulf %10, %13 : vector<16x16xf32>
    %15 = vector.broadcast %4 : f32 to vector<16x16xf32>
    %16 = arith.addf %14, %15 : vector<16x16xf32>
    %c0_0 = arith.constant 0 : index
    %c0_1 = arith.constant 0 : index
    %c0_2 = arith.constant 0 : index
    %c0_3 = arith.constant 0 : index
    %17 = vector.load %arg3[%c0_0, %c0_1, %c0_2, %c0_3] : memref<1x2x16x16xf32, #tpu.memory_space<vmem>>, vector<1x1x16x16xf32>
    %18 = vector.shape_cast %17 : vector<1x1x16x16xf32> to vector<16x16xf32>
    %19 = vector.shape_cast %16 : vector<16x16xf32> to vector<1x1x16x16xf32>
    tpu.vector_store %arg3[%c0_0, %c0_1, %c0_2, %c0_3], %19 {strides = array<i32>} : memref<1x2x16x16xf32, #tpu.memory_space<vmem>>, vector<1x1x16x16xf32>,
    %20 = vector.broadcast %2 : f32 to vector<16x16xf32>
    %21 = arith.mulf %12, %20 : vector<16x16xf32>
    %22 = vector.broadcast %6 : f32 to vector<16x16xf32>
    %23 = arith.addf %21, %22 : vector<16x16xf32>
    %c0_4 = arith.constant 0 : index
    %c1_5 = arith.constant 1 : index
    %c0_6 = arith.constant 0 : index
    %c0_7 = arith.constant 0 : index
    %24 = vector.load %arg3[%c0_4, %c1_5, %c0_6, %c0_7] : memref<1x2x16x16xf32, #tpu.memory_space<vmem>>, vector<1x1x16x16xf32>
    %25 = vector.shape_cast %24 : vector<1x1x16x16xf32> to vector<16x16xf32>
    %26 = vector.shape_cast %23 : vector<16x16xf32> to vector<1x1x16x16xf32>
    tpu.vector_store %arg3[%c0_4, %c1_5, %c0_6, %c0_7], %26 {strides = array<i32>} : memref<1x2x16x16xf32, #tpu.memory_space<vmem>>, vector<1x1x16x16xf32>,
    return
  }
  func.func @transform_0(%arg0: i32, %arg1: i32) -> (i32, i32) {
    %c0_i32 = arith.constant 0 : i32
    %c0_i32_0 = arith.constant 0 : i32
    %c0_i32_1 = arith.constant 0 : i32
    return %c0_i32, %c0_i32_0 : i32, i32
  }
  func.func @transform_1(%arg0: i32, %arg1: i32) -> (i32, i32, i32, i32) {
    %c0_i32 = arith.constant 0 : i32
    %c0_i32_0 = arith.constant 0 : i32
    %c0_i32_1 = arith.constant 0 : i32
    return %arg0, %c0_i32, %arg1, %c0_i32_0 : i32, i32, i32, i32
  }
}

</mosaic_0001>

<bundles_post_ra>
// kernel: tpu_custom_call.1
= control target key start
LH: loop header
LB: loop body
LE: loop exit
PB: predicated region body
PF: predicated region fallthrough
CT: control target
= control target key end

     0   :  { %6 = vsyncpa [#allocation4], 0  ;;  %s552_s0 = inlined_call_operand.hbm [shape: f32[2,3], index: 0, kind: input, shape index: {}]   ;;  %s553_s1 = inlined_call_operand.hbm [shape: f32[2,2,16,16], index: 1, kind: output, shape index: {}]  }
   0x1   :  { %7 = vsyncpa [#allocation3], 0 }
   0x2   :  { %9 = vsyncpa [#allocation3 + $0x1], 0  ;;  %s435_s6 = smov 0   ;;  %s437_s7 = smov 0  }
   0x3   :  { %s439_s8 = smov 0   ;;  %s441_s9 = smov 0  }
   0x4   :  { %s443_s10 = smov 0   ;;  %s445_s11 = smov 0  }
   0x5 LB: > { %s244_s12 = sadd.s32 4294967295, %s419_s11   ;;  %s245_s13 = sadd.s32 4294967294, %s419_s11   ;;  %s419_s11 = sphi %s445_s11, %s15_s11   ;;  %s415_s10 = sphi %s443_s10, %s560_s10   ;;  %s411_s9 = sphi %s441_s9, %s559_s9   ;;  %s407_s8 = sphi %s439_s8, %s558_s8   ;;  %s403_s7 = sphi %s437_s7, %s557_s7   ;;  %s399_s6 = sphi %s435_s6, %s556_s6  }
   0x6   : > { %s27_s14 = sadd.s32 1, %s415_s10  ;;  %s57_s15 = sadd.s32 1, %s407_s8 }
   0x7   : > { %p29_p0 = scmp.ge.s32.totalorder %s27_s14, 2  ;;  %p67_p1 = scmp.ne.s32.totalorder %s407_s8, %s403_s7 }
   0x8   : > { %p68_p2 = scmp.eq.s32.totalorder %s244_s12, 1  ;;  %p73_p3 = scmp.ne.s32.totalorder %s403_s7, %s399_s6 }
   0x9   : > { %s562_s14 = smov (%p29_p0, %s27_s14), 0  ;;  %p74_p5 = scmp.eq.s32.totalorder %s245_s13, 1 }
   0xa   : > { %p475_p4 = por %p68_p2, %p67_p1  ;;  %s52_s17 = ssub.s32 %s415_s10, %s562_s14 }
   0xb   : > { %p246_p6 = scmp.ge.s32.totalorder %s419_s11, 1  ;;  %p55_p7 = scmp.eq.s32.totalorder %s52_s17, 0 }
   0xc   : > { %p482_p8 = por %p74_p5, %p73_p3  ;;  %p81_p9 = scmp.lt.s32.totalorder %s419_s11, 3 }
   0xd   : > { %s488_s19 = scalar_select %p55_p7, %s407_s8, %s57_s15  }
   0xe   : > { %p82_p10 = pnand %p246_p6, %p81_p9  ;;  %p274_p11 = scmp.eq.s32.totalorder %s244_s12, 0 }
   0xf   : > { %s421_s20 = smov [#allocation2]  }
  0x10   : > { %p266_p12 = pneg %p82_p10  ;;  %105 = sbr.rel (%p82_p10) target bundleno = 53 (0x35), region = 24 }
  0x12   : > { %p267_p13 = pnand %p274_p11, %p266_p12 }
  0x14   : > { %269 = dma.hbm_to_smem (!%p267_p13), %s552_s0, 32, %s421_s20, [#allocation4]  }
  0x15   : > { %390 = dma.done.wait (%p274_p11), [#allocation4], 32  }
  0x16   : > { %392 = vsyncadd (%p274_p11), [#allocation4], 4294967264 }
  0x17   : > { %111 = sfence }
  0x18   : > { %s118_s23 = sand.u32 1, %s403_s7   ;;  %s251_s24 = sshll.u32 %s411_s9, 7  ;;  %v129_v0 = vlaneseq  ;;  %vm146_vm0 = vcmask 130048  }
  0x19   : > { %s124_s25 = sld [smem:[#allocation2 + %s251_s24]]  ;;  %s250_s26 = sshll.u32 %s118_s23, 5 }
  0x1a   : > { %s125_s27 = sadd.s32 1, %s251_s24  ;;  %v130_v1 = vshrl.u32 %v129_v0, 7  ;;  %v138_v2 = vand.u32 127, %v129_v0  ;;  %s127_s29 = sadd.s32 2, %s251_s24 }
  0x1b   : > { %s126_s28 = sld [smem:[#allocation2 + %s125_s27]]  ;;  %s120_s2 = scalar_lea.vmem [#allocation5], %s250_s26 }
  0x1c   : > { %v135_v3 = vcvt.s32.f32 %v130_v1  ;;  %v131_v4 = vadd.s32 8, %v130_v1  ;;  %v139_v5 = vcvt.s32.f32 %v138_v2  ;;  %s128_s30 = sld [smem:[#allocation2 + %s127_s29]]  ;;  %s171_s3 = sshll.u32 %s120_s2, 4  ;;  %s498_s3 = int_to_ptr.vmem [resolvable:$true] %s171_s3 }
  0x1d   : > { %s259_s4 = sshll.u32 %s411_s9, 9  ;;  %s507_s9 = scalar_lea.sflag [#allocation3], %s118_s23 }
  0x1e   : > { %v136_v6 = vcvt.s32.f32 %v131_v4  ;;  %s503_s13 = scalar_lea.hbm %s553_s1, %s259_s4  ;;  %s339_s15 = scalar_lea.vmem %s498_s3, 512 }
  0x1f   : > { %v140_v7 = vstv %s124_s25  ;;  %p340_p0 = scmp.ne.s32.totalorder %s498_s3, %s339_s15  ;;  %s422_s17 = smov [#allocation5]  }
  0x20   : > { %v141_v8 = vmul.f32 %v140_v7, %v135_v3  ;;  %v142_v9 = vmul.f32 %v140_v7, %v136_v6  ;;  %v149_v10 = vmul.f32 %v140_v7, %v139_v5  ;;  %s343_s20 = sshll.u32 %s422_s17, 4  ;;  %s344_s20 = int_to_ptr.vmem [resolvable:$false] %s343_s20 }
  0x21   : > { %v143_v11 = vstv %s126_s28  ;;  %p341_p1 = pnand %p340_p0, %p475_p4  ;;  %s345_s21 = scalar_lea.vmem %s344_s20, 1024 }
  0x22   : > { %v144_v12 = vadd.f32 %v143_v11, %v141_v8  ;;  %v145_v13 = vadd.f32 %v143_v11, %v142_v9  ;;  %v150_v14 = vstv %s128_s30  ;;  %p346_p3 = scmp.lt.s32.totalorder %s498_s3, %s344_s20  ;;  %p347_p5 = scmp.lt.s32.totalorder %s345_s21, %s339_s15 }
  0x23   : > { %v151_v15 = vadd.f32 %v150_v14, %v149_v10  ;;  %p342_p2 = pneg %p341_p1 }
  0x24   : > { %147 = vst.msk [vmem:[%s120_s2] sm:$0xff] %vm146_vm0, %v144_v12  ;;  %148 = vst.msk [vmem:[%s120_s2 + $0x8] sm:$0xff] %vm146_vm0, %v145_v13  ;;  %p348_p6 = por %p347_p5, %p346_p3 }
  0x25   : > { %252 = vst.msk [vmem:[%s120_s2 + $0x10] sm:$0xff] %vm146_vm0, %v151_v15  ;;  %253 = vst.msk [vmem:[%s120_s2 + $0x18] sm:$0xff] %vm146_vm0, %v151_v15 }
  0x26   : > { %p349_p7 = pnand %p348_p6, %p342_p2 }
  0x28   : > { %352 = shalt.err (!%p349_p7)
}
  0x29   : > { %s353_s22 = scalar_lea.hbm %s503_s13, 512  ;;  %s357_s25 = scalar_lea.hbm %s553_s1, 1024 }
  0x2a   : > { %p354_p9 = scmp.ne.s32.totalorder %s503_s13, %s353_s22  ;;  %p358_p12 = scmp.lt.s32.totalorder %s503_s13, %s553_s1 }
  0x2b   : > { %p359_p13 = scmp.lt.s32.totalorder %s357_s25, %s353_s22 }
  0x2c   : > { %p355_p10 = pnand %p354_p9, %p475_p4 }
  0x2d   : > { %p360_p0 = por %p359_p13, %p358_p12 }
  0x2e   : > { %p356_p11 = pneg %p355_p10 }
  0x30   : > { %p361_p1 = pnand %p360_p0, %p356_p11 }
  0x32   : > { %364 = shalt.err (!%p361_p1)
}
  0x33   : > { %s423_s28 = smov 128   ;;  %s424_s29 = smov 8  }
  0x34   : > { %264 = dma.vmem_to_hbm [thread:$0]  (%p475_p4), %s498_s3, 512, %s503_s13, %s507_s9, %s423_s28, %s423_s28, %s424_s29  }
  0x35 PF: > { %p276_p2 = scmp.ge.s32.totalorder %s419_s11, 2  ;;  %s186_s30 = sand.u32 1, %s399_s6  }
  0x36   : > { %s187_s2 = scalar_lea.sflag [#allocation3], %s186_s30 }
  0x37   : > { %p271_p3 = pnand %p276_p2, %p482_p8 }
  0x39   : > { %p272_p5 = pneg %p271_p3 }
  0x3b   : > { %394 = dma.done.wait (%p272_p5), %s187_s2, 512  }
  0x3c   : > { %396 = vsyncadd (%p272_p5), %s187_s2, 4294966784  ;;  %s15_s11 = sadd.s32 1, %s419_s11   ;;  %s556_s6 = smov %s403_s7 }
  0x3d   : > { %p12_p6 = scmp.ge.s32.totalorder %s15_s11, 4   ;;  %s557_s7 = smov %s407_s8 }
  0x3e   : > { %s558_s8 = smov %s488_s19  ;;  %s559_s9 = smov %s415_s10 }
  0x3f   : > { %s560_s10 = smov %s562_s14  ;;  %14 = sbr.rel (!%p12_p6) target bundleno = 5 (0x5), region = 62 }
  0x44   :  { %192 = vsyncpa [#allocation3], 1 }
  0x45   :  { %194 = vsyncpa [#allocation3 + $0x1], 1 }
  0x46   :  { %195 = vsyncpa [#allocation4], 1 }
  0x47   :  { %197 = vsyncpa [#allocation4 + $0x1], 1 }

</bundles_post_ra>
